<compile_context>
chip_gen: v5e
topology: v5e:2x2
jax: 0.10.0
libtpu: 0.0.40
codegen_flags: <defaults>
</compile_context>

<pallas_src>
import jax
import jax.numpy as jnp
from jax.experimental import pallas as pl
from jax.experimental.pallas import tpu as pltpu

LANE = 128      # vreg lane width
SUBLANE = 8     # vreg sublane count (f32); bf16 packs 16 rows/vreg


def _round_up(x, m):
    return (x + m - 1) // m * m


def _mxu_align(dim):
    # v6e/v7x MXUs are 2x256x256: once a logical dim reaches 256, pad to a
    # 256-multiple for full systolic-array width.  Below 256 keep 128-lane
    # alignment (full width on v5e's 4x128x128 MXU, acceptable on v6e/v7x).
    base = 256 if dim >= 256 else 128
    return _round_up(dim, base)


def _vmem_limit():
    # Per-generation scoped-VMEM budget: ~half of physical VMEM, clamped to
    # [32 MiB, 64 MiB].  -> 64 MiB on v5e/v6e (128 MiB phys), 32 MiB on v7x (64 MiB).
    cap = 64 * 1024 * 1024
    try:
        cap = int(pltpu.get_tpu_info().vmem_capacity_bytes)
    except Exception:
        pass
    return max(32 * 1024 * 1024, min(64 * 1024 * 1024, cap // 2))


# ----------------------------------------------------------------------------
# Kernel 1: fused 2-layer MLP Q-network forward.
# ----------------------------------------------------------------------------
def _qnet_kernel(x_ref, w1_ref, b1_ref, w2_ref, b2_ref, out_ref):
    h = jnp.dot(x_ref[...], w1_ref[...], preferred_element_type=jnp.float32)
    h = jnp.maximum(h + b1_ref[...].astype(jnp.float32), 0.0)          # f32 VPU (v5e-safe)
    q = jnp.dot(h.astype(jnp.bfloat16), w2_ref[...],
                preferred_element_type=jnp.float32)
    out_ref[...] = (q + b2_ref[...].astype(jnp.float32)).astype(out_ref.dtype)


def qnet_forward(x, params, n_actions):
    """Q(s) = relu(x @ W1 + b1) @ W2 + b2 with lane-dense padded params (bf16 out)."""
    B, obs = x.shape
    hid_p = params["w1"].shape[1]          # 128/256-multiple
    act_p = params["w2"].shape[1]          # 128/256-multiple

    # Batch tiling: round to 16 (bf16 sublane packing).  For large batches split
    # into >=2 blocks (<=512 rows each) so the "parallel" axis shards across the
    # two v7x TensorCores; small batches stay a single exact block (no host pad
    # beyond the 16-row rounding).
    b16 = _round_up(max(B, 1), 16)
    if b16 >= 256:
        tb = min(512, _round_up(b16 // 2, 16))
    else:
        tb = b16
    b_pad = _round_up(b16, tb)

    xp = x.astype(jnp.bfloat16)
    if b_pad != B:
        # NOTE: padded rows produce garbage q-values; they are dropped by the
        # final [:B] slice and must never feed a batch reduction.
        xp = jnp.pad(xp, ((0, b_pad - B), (0, 0)))

    out = pl.pallas_call(
        _qnet_kernel,
        out_shape=jax.ShapeDtypeStruct((b_pad, act_p), jnp.bfloat16),  # bf16: half vst/HBM
        grid=(b_pad // tb,),
        in_specs=[
            pl.BlockSpec((tb, obs), lambda i: (i, 0)),        # activations: tiled over batch
            pl.BlockSpec((obs, hid_p), lambda i: (0, 0)),     # W1: resident
            pl.BlockSpec((1, hid_p), lambda i: (0, 0)),       # b1: resident, lane-dense
            pl.BlockSpec((hid_p, act_p), lambda i: (0, 0)),   # W2: resident
            pl.BlockSpec((1, act_p), lambda i: (0, 0)),       # b2: resident, lane-dense
        ],
        out_specs=pl.BlockSpec((tb, act_p), lambda i: (i, 0)),
        compiler_params=pltpu.CompilerParams(
            dimension_semantics=("parallel",),                # dual-TC sharding on v7x
            vmem_limit_bytes=_vmem_limit(),
        ),
    )(xp, params["w1"], params["b1"], params["w2"], params["b2"])

    return out[:B, :n_actions]


# ----------------------------------------------------------------------------
# Kernel 2: sync_weight — one pallas_call, one (src, tgt) pair per tensor,
# each target tensor aliased to its own output (true in-place soft update).
# ----------------------------------------------------------------------------
def sync_weight(qf_params, qf_target_params, tau):
    keys = sorted(qf_params.keys())
    n = len(keys)
    tau = float(tau)

    def _kernel(*refs):
        srcs, tgts, outs = refs[:n], refs[n:2 * n], refs[2 * n:]
        for s, t, o in zip(srcs, tgts, outs):
            sv = s[...].astype(jnp.float32)
            tv = t[...].astype(jnp.float32)
            o[...] = (tau * sv + (1.0 - tau) * tv).astype(o.dtype)

    out_shape = tuple(
        jax.ShapeDtypeStruct(qf_target_params[k].shape, qf_target_params[k].dtype)
        for k in keys)
    aliases = {n + i: i for i in range(n)}   # each tgt input -> its own output buffer

    outs = pl.pallas_call(
        _kernel,
        out_shape=out_shape,
        input_output_aliases=aliases,
        compiler_params=pltpu.CompilerParams(vmem_limit_bytes=_vmem_limit()),
    )(*[qf_params[k] for k in keys], *[qf_target_params[k] for k in keys])

    return {k: o for k, o in zip(keys, outs)}


# ----------------------------------------------------------------------------
# Deterministic parameter init (stored padded, lane-dense) and driver
# ----------------------------------------------------------------------------
def init_params(key, obs_dim, hidden, n_actions, dtype=jnp.bfloat16):
    """Params stored lane-dense: hidden/action dims zero-padded to MXU-aligned widths."""
    hid_p = _mxu_align(hidden)
    act_p = _mxu_align(n_actions)
    k1, k2, k3, k4 = jax.random.split(key, 4)
    s1 = 1.0 / float(obs_dim) ** 0.5
    s2 = 1.0 / float(hidden) ** 0.5
    w1 = jax.random.uniform(k1, (obs_dim, hidden), jnp.float32, -s1, s1)
    b1 = jax.random.uniform(k2, (1, hidden), jnp.float32, -s1, s1)
    w2 = jax.random.uniform(k3, (hidden, n_actions), jnp.float32, -s2, s2)
    b2 = jax.random.uniform(k4, (1, n_actions), jnp.float32, -s2, s2)
    return {
        "w1": jnp.pad(w1, ((0, 0), (0, hid_p - hidden))).astype(dtype),
        "b1": jnp.pad(b1, ((0, 0), (0, hid_p - hidden))).astype(dtype),
        "w2": jnp.pad(w2, ((0, hid_p - hidden), (0, act_p - n_actions))).astype(dtype),
        "b2": jnp.pad(b2, ((0, 0), (0, act_p - n_actions))).astype(dtype),
    }


if __name__ == "__main__":
    B, OBS, HID, ACT = 8, 16, 32, 4    # logical (small) shapes; physical dims lane-padded
    TAU = 0.05

    key = jax.random.PRNGKey(0)
    kx, kq, kt = jax.random.split(key, 3)

    x = jax.random.normal(kx, (B, OBS), jnp.float32)
    qf = init_params(kq, OBS, HID, ACT, dtype=jnp.bfloat16)        # online net (bf16 for MXU)
    qf_target = init_params(kt, OBS, HID, ACT, dtype=jnp.float32)  # target net: f32 master copy

    # Q-network forward (Pallas kernel)
    q_values = jax.block_until_ready(qnet_forward(x, qf, ACT))

    # sync_weight: one fused, per-tensor-aliased soft update (single kernel launch)
    new_target = jax.block_until_ready(sync_weight(qf, qf_target, TAU))

    # -------- reference checks in plain JAX (same rounding points) ----------
    f32 = jnp.float32
    xb = x.astype(jnp.bfloat16).astype(f32)
    w1, b1 = qf["w1"].astype(f32), qf["b1"].astype(f32)
    w2, b2 = qf["w2"].astype(f32), qf["b2"].astype(f32)
    h_ref = jnp.maximum(xb @ w1 + b1, 0.0)
    h_ref = h_ref.astype(jnp.bfloat16).astype(f32)     # kernel feeds bf16 h to 2nd matmul
    q_ref = (h_ref @ w2 + b2)[:, :ACT].astype(jnp.bfloat16).astype(f32)  # bf16 output store
    assert jnp.allclose(q_values.astype(f32), q_ref, atol=2e-2, rtol=2e-2), \
        "qnet forward mismatch"

    for k in qf:
        ref = TAU * qf[k].astype(f32) + (1.0 - TAU) * qf_target[k].astype(f32)
        assert new_target[k].dtype == qf_target[k].dtype, f"target dtype changed: {k}"
        assert jnp.allclose(new_target[k].astype(f32), ref, atol=1e-4, rtol=1e-4), \
            f"soft update mismatch: {k}"

    print("KERNEL_OK")
</pallas_src>

<mosaic_0001>
module attributes {stable_mosaic.version = 11 : i64} {
  func.func @_qnet_kernel(%arg0: i32, %arg1: memref<16x16xbf16, #tpu.memory_space<vmem>>, %arg2: memref<16x128xbf16, #tpu.memory_space<vmem>>, %arg3: memref<1x128xbf16, #tpu.memory_space<vmem>>, %arg4: memref<128x128xbf16, #tpu.memory_space<vmem>>, %arg5: memref<1x128xbf16, #tpu.memory_space<vmem>>, %arg6: memref<16x128xbf16, #tpu.memory_space<vmem>>) attributes {dimension_semantics = [#tpu.dimension_semantics<parallel>], iteration_bounds = array<i64: 1>, scalar_prefetch = 0 : i64, scratch_operands = 0 : i64, tpu.core_type = #tpu.core_type<tc>, window_params = [{transform_indices = @transform_0, window_bounds = array<i64: 16, 16>}, {pipeline_mode = #tpu.pipeline_mode<synchronous>, transform_indices = @transform_1, window_bounds = array<i64: 16, 128>}, {pipeline_mode = #tpu.pipeline_mode<synchronous>, transform_indices = @transform_2, window_bounds = array<i64: 1, 128>}, {pipeline_mode = #tpu.pipeline_mode<synchronous>, transform_indices = @transform_3, window_bounds = array<i64: 128, 128>}, {pipeline_mode = #tpu.pipeline_mode<synchronous>, transform_indices = @transform_4, window_bounds = array<i64: 1, 128>}, {transform_indices = @transform_5, window_bounds = array<i64: 16, 128>}]} {
    %c0 = arith.constant 0 : index
    %c0_0 = arith.constant 0 : index
    %0 = vector.load %arg1[%c0, %c0_0] : memref<16x16xbf16, #tpu.memory_space<vmem>>, vector<16x16xbf16>
    %c0_1 = arith.constant 0 : index
    %c0_2 = arith.constant 0 : index
    %1 = vector.load %arg2[%c0_1, %c0_2] : memref<16x128xbf16, #tpu.memory_space<vmem>>, vector<16x128xbf16>
    %cst = arith.constant dense<0.000000e+00> : vector<16x128xf32>
    %2 = tpu.matmul %0, %1, %cst {dimension_numbers = #tpu.dot_dimension_numbers<[1], [0], [0], [1], [0, 0, 1, 1], [], []>} : vector<16x16xbf16>, vector<16x128xbf16>, vector<16x128xf32> -> vector<16x128xf32>
    %c0_3 = arith.constant 0 : index
    %c0_4 = arith.constant 0 : index
    %3 = vector.load %arg3[%c0_3, %c0_4] : memref<1x128xbf16, #tpu.memory_space<vmem>>, vector<1x128xbf16>
    %4 = arith.extf %3 : vector<1x128xbf16> to vector<1x128xf32>
    %5 = vector.broadcast %4 : vector<1x128xf32> to vector<16x128xf32>
    %6 = arith.addf %2, %5 : vector<16x128xf32>
    %cst_5 = arith.constant 0.000000e+00 : f32
    %7 = vector.broadcast %cst_5 : f32 to vector<16x128xf32>
    %8 = arith.maximumf %6, %7 : vector<16x128xf32>
    %9 = arith.truncf %8 : vector<16x128xf32> to vector<16x128xbf16>
    %c0_6 = arith.constant 0 : index
    %c0_7 = arith.constant 0 : index
    %10 = vector.load %arg4[%c0_6, %c0_7] : memref<128x128xbf16, #tpu.memory_space<vmem>>, vector<128x128xbf16>
    %cst_8 = arith.constant dense<0.000000e+00> : vector<16x128xf32>
    %11 = tpu.matmul %9, %10, %cst_8 {dimension_numbers = #tpu.dot_dimension_numbers<[1], [0], [0], [1], [0, 0, 1, 1], [], []>} : vector<16x128xbf16>, vector<128x128xbf16>, vector<16x128xf32> -> vector<16x128xf32>
    %c0_9 = arith.constant 0 : index
    %c0_10 = arith.constant 0 : index
    %12 = vector.load %arg5[%c0_9, %c0_10] : memref<1x128xbf16, #tpu.memory_space<vmem>>, vector<1x128xbf16>
    %13 = arith.extf %12 : vector<1x128xbf16> to vector<1x128xf32>
    %14 = vector.broadcast %13 : vector<1x128xf32> to vector<16x128xf32>
    %15 = arith.addf %11, %14 : vector<16x128xf32>
    %16 = arith.truncf %15 : vector<16x128xf32> to vector<16x128xbf16>
    %c0_11 = arith.constant 0 : index
    %c0_12 = arith.constant 0 : index
    %17 = vector.load %arg6[%c0_11, %c0_12] : memref<16x128xbf16, #tpu.memory_space<vmem>>, vector<16x128xbf16>
    tpu.vector_store %arg6[%c0_11, %c0_12], %16 {strides = array<i32>} : memref<16x128xbf16, #tpu.memory_space<vmem>>, vector<16x128xbf16>,
    return
  }
  func.func @transform_0(%arg0: i32) -> (i32, i32) {
    %c0_i32 = arith.constant 0 : i32
    %c0_i32_0 = arith.constant 0 : i32
    return %arg0, %c0_i32 : i32, i32
  }
  func.func @transform_1(%arg0: i32) -> (i32, i32) {
    %c0_i32 = arith.constant 0 : i32
    %c0_i32_0 = arith.constant 0 : i32
    %c0_i32_1 = arith.constant 0 : i32
    return %c0_i32, %c0_i32_0 : i32, i32
  }
  func.func @transform_2(%arg0: i32) -> (i32, i32) {
    %c0_i32 = arith.constant 0 : i32
    %c0_i32_0 = arith.constant 0 : i32
    %c0_i32_1 = arith.constant 0 : i32
    return %c0_i32, %c0_i32_0 : i32, i32
  }
  func.func @transform_3(%arg0: i32) -> (i32, i32) {
    %c0_i32 = arith.constant 0 : i32
    %c0_i32_0 = arith.constant 0 : i32
    %c0_i32_1 = arith.constant 0 : i32
    return %c0_i32, %c0_i32_0 : i32, i32
  }
  func.func @transform_4(%arg0: i32) -> (i32, i32) {
    %c0_i32 = arith.constant 0 : i32
    %c0_i32_0 = arith.constant 0 : i32
    %c0_i32_1 = arith.constant 0 : i32
    return %c0_i32, %c0_i32_0 : i32, i32
  }
  func.func @transform_5(%arg0: i32) -> (i32, i32) {
    %c0_i32 = arith.constant 0 : i32
    %c0_i32_0 = arith.constant 0 : i32
    return %arg0, %c0_i32 : i32, i32
  }
}

</mosaic_0001>

<bundles_post_ra>
// kernel: tpu_custom_call.1
= control target key start
LH: loop header
LB: loop body
LE: loop exit
PB: predicated region body
PF: predicated region fallthrough
CT: control target
= control target key end

     0   :  { %10 = vsyncpa [#allocation3], 0  ;;  %s443_s0 = inlined_call_operand.hbm [shape: bf16[16,16], index: 0, kind: input, shape index: {}]   ;;  %s444_s1 = inlined_call_operand.hbm [shape: bf16[16,128], index: 1, kind: input, shape index: {}]   ;;  %s445_s2 = inlined_call_operand.vmem [shape: bf16[1,128], index: 2, kind: input, shape index: {}]   ;;  %s446_s3 = inlined_call_operand.hbm [shape: bf16[128,128], index: 3, kind: input, shape index: {}]   ;;  %s447_s4 = inlined_call_operand.vmem [shape: bf16[1,128], index: 4, kind: input, shape index: {}]   ;;  %s448_s5 = inlined_call_operand.hbm [shape: bf16[16,128], index: 5, kind: output, shape index: {}]  }
   0x1   :  { %11 = vsyncpa [#allocation6], 0 }
   0x2   :  { %12 = vsyncpa [#allocation4], 0  ;;  %s30_s20 = sshll.u32 %s444_s1, 4  ;;  %s377_s21 = smov [#allocation5]   ;;  %s31_s20 = int_to_ptr.hbm [resolvable:$true] %s30_s20 }
   0x3   :  { %s32_s22 = sshll.u32 %s377_s21, 4  ;;  %s17_s25 = sshll.u32 %s443_s0, 4  ;;  %s33_s22 = int_to_ptr.vmem [resolvable:$true] %s32_s22  ;;  %s18_s25 = int_to_ptr.hbm [resolvable:$true] %s17_s25 }
   0x4   :  { %s378_s26 = smov 64   ;;  %s379_s27 = smov 4  }
   0x5   :  { %38 = dma.hbm_to_vmem [thread:$0]  %s31_s20, 128, %s33_s22, [#allocation6], %s378_s26, %s378_s26, %s379_s27  }
   0x6   :  { %s380_s28 = smov [#allocation2]   ;;  %s45_s1 = sshll.u32 %s446_s3, 4  ;;  %s46_s1 = int_to_ptr.hbm [resolvable:$true] %s45_s1 }
   0x7   :  { %s19_s29 = sshll.u32 %s380_s28, 4  ;;  %s381_s0 = smov [#allocation7]   ;;  %s20_s29 = int_to_ptr.vmem [resolvable:$true] %s19_s29 }
   0x8   :  { %25 = dma.hbm_to_vmem [thread:$0]  %s18_s25, 128, %s20_s29, [#allocation3], %s378_s26, %s378_s26, %s379_s27  }
   0x9   :  { %s47_s7 = sshll.u32 %s381_s0, 4  ;;  %s48_s7 = int_to_ptr.vmem [resolvable:$true] %s47_s7 }
   0xa   :  { %53 = dma.hbm_to_vmem [thread:$0]  %s46_s1, 1024, %s48_s7, [#allocation6], %s378_s26, %s378_s26, %s379_s27  }
   0xb   :  { %371 = dma.done.wait [#allocation3], 128  }
   0xc   :  { %372 = vsyncadd [#allocation3], 4294967168 }
   0xd   :  { %373 = dma.done.wait [#allocation6], 1152  }
   0xe   :  { %374 = vsyncadd [#allocation6], 4294966144  ;;  %v255_v0 = vld [vmem:[#allocation5] sm:$0xff]  ;;  %v254_v2 = vld [vmem:[#allocation2] sm:$0xff]  ;;  %vm87_vm0 = vcmask 130048   ;;  %s382_s11 = smov [#allocation8]  }
   0xf   :  { %v263_v1 = vld [vmem:[#allocation7 + $0x38] sm:$0xff]  ;;  %98 = vmatpush.bf16.msra.mxu0 %v255_v0  ;;  %v262_v3 = vld [vmem:[#allocation7 + $0x30] sm:$0xff]  ;;  %v261_v4 = vld [vmem:[#allocation7 + $0x28] sm:$0xff]  ;;  %s199_s14 = sshll.u32 %s448_s5, 4  ;;  %s200_s14 = int_to_ptr.hbm [resolvable:$true] %s199_s14 }
  0x10   :  { %175 = vmatpush.bf16.msra.mxu1 %v263_v1  ;;  %v260_v5 = vld [vmem:[#allocation7 + $0x20] sm:$0xff]  ;;  %v259_v6 = vld [vmem:[#allocation7 + $0x18] sm:$0xff]  ;;  %v258_v7 = vld [vmem:[#allocation7 + $0x10] sm:$0xff] }
  0x11   :  { %v257_v8 = vld [vmem:[#allocation7 + $0x8] sm:$0xff]  ;;  %v256_v9 = vld [vmem:[#allocation7] sm:$0xff]  ;;  %v73_v10 = vld [vmem:[%s445_s2] sm:$0x1]  ;;  %s197_s2 = sshll.u32 %s382_s11, 4  ;;  %s198_s2 = int_to_ptr.vmem [resolvable:$true] %s197_s2 }
  0x12   :  { %221 = vmatmul.msk.bf16.vlgmr.msra.gmra.mxu0 %vm87_vm0, %v254_v2  ;;  %v74_v11 = vunpack.c.l.bf16 %v73_v10  ;;  %v124_v20 = vld [vmem:[%s447_s4] sm:$0x1] }
  0x13   :  { %v125_v22 = vunpack.c.l.bf16 %v124_v20 }
  0x14   :  { %176 = vmatpush.bf16.msra.mxu1 %v262_v3  ;;  %v75_v13 = vperm.slane %v74_v11, 0 }
  0x15   :  { %v126_v23 = vperm.slane %v125_v22, 0 }
  0x18   :  { %177 = vmatpush.bf16.msra.mxu1 %v261_v4 }
  0x1c   :  { %178 = vmatpush.bf16.msra.mxu1 %v260_v5 }
  0x20   :  { %179 = vmatpush.bf16.msra.mxu1 %v259_v6 }
  0x24   :  { %180 = vmatpush.bf16.msra.mxu1 %v258_v7 }
  0x28   :  { %181 = vmatpush.bf16.msra.mxu1 %v257_v8 }
  0x2c   :  { %182 = vmatpush.bf16.msra.mxu1 %v256_v9 }
  0x8f   :  { %v100_v12 = vpop.f32.mrf.mxu0 }
  0x90   :  { %v101_v14 = vadd.f32 %v100_v12, %v75_v13 }
  0x92   :  { %v105_v17 = vmax.f32 %v101_v14, 0.0 }
  0x97   :  { %v102_v15 = vpop.f32.mrf.mxu0 }
  0x98   :  { %v103_v16 = vadd.f32 %v102_v15, %v75_v13 }
  0x9a   :  { %v106_v18 = vmax.f32 %v103_v16, 0.0 }
  0x9c   :  { %v107_v19 = vpack.c.bf16 %v106_v18, %v105_v17 }
  0x9e   :  { %183 = vmatmul.bf16.vlgmr.msra.gmra.mxu1 %v107_v19 }
 0x11b   :  { %v184_v21 = vpop.f32.mrf.mxu1 }
 0x11c   :  { %v185_v25 = vadd.f32 %v184_v21, %v126_v23 }
 0x123   :  { %v186_v24 = vpop.f32.mrf.mxu1 }
 0x124   :  { %v187_v26 = vadd.f32 %v186_v24, %v126_v23 }
 0x126   :  { %v267_v27 = vpack.c.bf16 %v187_v26, %v185_v25 }
 0x128   :  { %268 = vst [vmem:[#allocation8] sm:$0xff] %v267_v27  }
 0x129   :  { %205 = dma.vmem_to_hbm [thread:$0]  %s198_s2, 128, %s200_s14, [#allocation4], %s378_s26, %s378_s26, %s379_s27  }
 0x12a   :  { %375 = dma.done.wait [#allocation4], 128  }
 0x12b   :  { %376 = vsyncadd [#allocation4], 4294967168 }
 0x12c   :  { %210 = vsyncpa [#allocation3], 1 }
 0x12d   :  { %211 = vsyncpa [#allocation6], 1 }
 0x12e   :  { %212 = vsyncpa [#allocation4], 1 }

</bundles_post_ra>
